<compile_context>
chip_gen: v7x
topology: tpu7x:2x2x1
jax: 0.10.0
libtpu: 0.0.40
codegen_flags: <defaults>
</compile_context>

<pallas_src>
import jax
import jax.numpy as jnp
from jax import lax
from jax.experimental import pallas as pl
from jax.experimental.pallas import tpu as pltpu

H1 = 128   # first hidden width
H2 = 64    # second hidden width
_TILE_CAP = 8192            # max batch rows per grid step (lane-dim tile)
_VMEM_LIMIT = 48 * 1024 * 1024


def _round_up(x, m):
    return -(-x // m) * m


def _pad_to(x, shape):
    pads = [(0, t - s) for s, t in zip(x.shape, shape)]
    return jnp.pad(x, pads)


def _has_two_tensorcores():
    """Best-effort: does one Pallas program see two TensorCores (v7x)?"""
    try:
        kind = jax.devices()[0].device_kind.lower()
    except Exception:
        return False
    return ("v7" in kind) or ("7x" in kind)


def _choose_grid(batch, two_core, tile_cap):
    """Near-exact batch split: grid steps, lane-aligned tile size."""
    b8 = _round_up(max(batch, 1), 8)
    grid = pl.cdiv(b8, tile_cap)
    if two_core and b8 >= 256:
        # Even number of >=2 steps so both v7x TensorCores get a half-batch.
        grid = _round_up(max(grid, 2), 2)
    if grid == 1:
        return 1, b8                      # block == full array, any size legal
    tile = _round_up(pl.cdiv(b8, grid), 128)   # lane-dim tiles must be 128-aligned
    return grid, tile


def _make_kernel(compute_dtype):
    # Contract both operands on their last axis (q @ k^T pattern).
    trans_b_dims = (((1,), (1,)), ((), ()))

    def dqn_kernel(x_ref, w1t_ref, b1_ref, w2t_ref, b2_ref, w3t_ref, b3_ref,
                   o_ref):
        x = x_ref[...].astype(compute_dtype)                      # (T, S)
        # h1^T = W1^T @ x^T : (128, S) x (T, S) -> (128, T), f32 accumulate.
        h1 = lax.dot_general(w1t_ref[...], x, trans_b_dims,
                             preferred_element_type=jnp.float32)
        h1 = jnp.maximum(h1 + b1_ref[...], 0.0)                   # bias (128,1)
        # h2^T = W2^T @ h1^T : (64, 128) x (128, T) -> (64, T)
        h2 = jnp.dot(w2t_ref[...], h1.astype(compute_dtype),
                     preferred_element_type=jnp.float32)
        h2 = jnp.maximum(h2 + b2_ref[...], 0.0)                   # bias (64,1)
        # q^T = W3^T @ h2^T : (A8, 64) x (64, T) -> (A8, T)
        q = jnp.dot(w3t_ref[...], h2.astype(compute_dtype),
                    preferred_element_type=jnp.float32)
        o_ref[...] = q + b3_ref[...]                              # bias (A8,1)

    return dqn_kernel


def dqn_forward(state, params, *, compute_dtype=jnp.bfloat16,
                tile_cap=_TILE_CAP):
    """Fused DQN MLP forward.

    state:  (B, state_dim) float32
    params: dict with w1 (S,128), b1 (1,128), w2 (128,64), b2 (1,64),
            w3 (64,A), b3 (1,A)
    compute_dtype: matmul operand dtype (bf16 default, f32 accumulate;
                   f32 operands for the exact path).
    Returns (B, A) float32 Q-values.
    """
    B, S = state.shape
    A = params["w3"].shape[1]
    A8 = _round_up(A, 8)

    two_core = _has_two_tensorcores()
    grid_n, tile_b = _choose_grid(B, two_core, tile_cap)
    B_pad = grid_n * tile_b
    if B_pad != B:
        state = jnp.pad(state, ((0, B_pad - B), (0, 0)))

    # Feature-major weights/biases (tiny; transposed once per call in XLA).
    w1t = params["w1"].T.astype(compute_dtype)                       # (128, S)
    b1c = params["b1"].reshape(H1, 1).astype(jnp.float32)            # (128, 1)
    w2t = params["w2"].T.astype(compute_dtype)                       # (64, 128)
    b2c = params["b2"].reshape(H2, 1).astype(jnp.float32)            # (64, 1)
    w3t = _pad_to(params["w3"].T, (A8, H2)).astype(compute_dtype)    # (A8, 64)
    b3c = _pad_to(params["b3"].reshape(A, 1), (A8, 1)).astype(jnp.float32)

    # Weights/biases use constant block indices -> DMA'd once, VMEM-resident.
    full = lambda arr: pl.BlockSpec(arr.shape, lambda i: (0, 0))

    itemsize = jnp.dtype(compute_dtype).itemsize
    flops = 2 * B_pad * (S * H1 + H1 * H2 + H2 * A8)
    bytes_accessed = (
        B_pad * S * 4                                    # state in (f32)
        + (w1t.size + w2t.size + w3t.size) * itemsize    # weights (once)
        + (b1c.size + b2c.size + b3c.size) * 4           # biases (once)
        + B_pad * A8 * 4                                 # packed Q output
    )
    cost = pl.CostEstimate(flops=flops, transcendentals=0,
                           bytes_accessed=bytes_accessed)

    if two_core and grid_n >= 2:
        sem = getattr(pltpu, "CORE_PARALLEL", "parallel")
    else:
        sem = getattr(pltpu, "PARALLEL", "parallel")

    qT = pl.pallas_call(
        _make_kernel(compute_dtype),
        out_shape=jax.ShapeDtypeStruct((A8, B_pad), jnp.float32),
        grid_spec=pltpu.PrefetchScalarGridSpec(
            num_scalar_prefetch=0,
            grid=(grid_n,),
            in_specs=[
                pl.BlockSpec((tile_b, S), lambda i: (i, 0)),   # state tile
                full(w1t), full(b1c),
                full(w2t), full(b2c),
                full(w3t), full(b3c),
            ],
            # Output is tiled along its lane (batch) axis -> fully contiguous,
            # lane-dense HBM writes of only A8 f32 per batch row.
            out_specs=pl.BlockSpec((A8, tile_b), lambda i: (0, i)),
        ),
        compiler_params=pltpu.CompilerParams(
            dimension_semantics=(sem,),
            vmem_limit_bytes=_VMEM_LIMIT),
        cost_estimate=cost,
    )(state, w1t, b1c, w2t, b2c, w3t, b3c)

    # (A8, B_pad) -> (B, A); tiny slice + transpose in XLA.
    return qT[:A, :B].T


def init_params(key, state_dim, action_dim):
    """Deterministic synthetic init (uniform, PyTorch-Linear-like scale)."""
    ks = jax.random.split(key, 6)

    def linear(kw, kb, fan_in, fan_out):
        bound = 1.0 / jnp.sqrt(fan_in)
        w = jax.random.uniform(kw, (fan_in, fan_out), jnp.float32, -bound, bound)
        b = jax.random.uniform(kb, (1, fan_out), jnp.float32, -bound, bound)
        return w, b

    w1, b1 = linear(ks[0], ks[1], state_dim, 128)
    w2, b2 = linear(ks[2], ks[3], 128, 64)
    w3, b3 = linear(ks[4], ks[5], 64, action_dim)
    return {"w1": w1, "b1": b1, "w2": w2, "b2": b2, "w3": w3, "b3": b3}


def dqn_reference(state, p):
    h1 = jnp.maximum(state @ p["w1"] + p["b1"], 0.0)
    h2 = jnp.maximum(h1 @ p["w2"] + p["b2"], 0.0)
    return h2 @ p["w3"] + p["b3"]


if __name__ == "__main__":
    key = jax.random.PRNGKey(0)
    k_param, k_state = jax.random.split(key)

    batch, state_dim, action_dim = 8, 16, 4
    params = init_params(k_param, state_dim, action_dim)
    state = jax.random.normal(k_state, (batch, state_dim), dtype=jnp.float32)

    q_ref = dqn_reference(state, params)

    # f32-operand (exact) path.
    q_f32 = jax.block_until_ready(
        dqn_forward(state, params, compute_dtype=jnp.float32))
    assert q_f32.shape == (batch, action_dim)
    assert jnp.allclose(q_f32, q_ref, atol=2e-4, rtol=2e-4), "f32 mismatch"

    # bf16-operand / f32-accumulate default path (MXU fast path on all chips).
    # Note: ~1e-2 Q-value error is fine for DQN training; use the f32 path if
    # exact greedy-action tie-breaking matters.
    q_bf16 = jax.block_until_ready(dqn_forward(state, params))
    assert q_bf16.shape == (batch, action_dim)
    assert jnp.allclose(q_bf16, q_ref, atol=5e-2, rtol=5e-2), "bf16 mismatch"

    print("KERNEL_OK")
</pallas_src>

<mosaic_0001>
module attributes {stable_mosaic.version = 11 : i64} {
  func.func @dqn_kernel(%arg0: i32, %arg1: memref<8x16xf32, #tpu.memory_space<vmem>>, %arg2: memref<128x16xf32, #tpu.memory_space<vmem>>, %arg3: memref<128x1xf32, #tpu.memory_space<vmem>>, %arg4: memref<64x128xf32, #tpu.memory_space<vmem>>, %arg5: memref<64x1xf32, #tpu.memory_space<vmem>>, %arg6: memref<8x64xf32, #tpu.memory_space<vmem>>, %arg7: memref<8x1xf32, #tpu.memory_space<vmem>>, %arg8: memref<8x8xf32, #tpu.memory_space<vmem>>) attributes {dimension_semantics = [#tpu.dimension_semantics<parallel>], iteration_bounds = array<i64: 1>, scalar_prefetch = 0 : i64, scratch_operands = 0 : i64, tpu.core_type = #tpu.core_type<tc>, window_params = [{transform_indices = @transform_0, window_bounds = array<i64: 8, 16>}, {pipeline_mode = #tpu.pipeline_mode<synchronous>, transform_indices = @transform_1, window_bounds = array<i64: 128, 16>}, {pipeline_mode = #tpu.pipeline_mode<synchronous>, transform_indices = @transform_2, window_bounds = array<i64: 128, 1>}, {pipeline_mode = #tpu.pipeline_mode<synchronous>, transform_indices = @transform_3, window_bounds = array<i64: 64, 128>}, {pipeline_mode = #tpu.pipeline_mode<synchronous>, transform_indices = @transform_4, window_bounds = array<i64: 64, 1>}, {pipeline_mode = #tpu.pipeline_mode<synchronous>, transform_indices = @transform_5, window_bounds = array<i64: 8, 64>}, {pipeline_mode = #tpu.pipeline_mode<synchronous>, transform_indices = @transform_6, window_bounds = array<i64: 8, 1>}, {transform_indices = @transform_7, window_bounds = array<i64: 8, 8>}]} {
    %c0 = arith.constant 0 : index
    %c0_0 = arith.constant 0 : index
    %0 = vector.load %arg1[%c0, %c0_0] : memref<8x16xf32, #tpu.memory_space<vmem>>, vector<8x16xf32>
    %c0_1 = arith.constant 0 : index
    %c0_2 = arith.constant 0 : index
    %1 = vector.load %arg2[%c0_1, %c0_2] : memref<128x16xf32, #tpu.memory_space<vmem>>, vector<128x16xf32>
    %cst = arith.constant dense<0.000000e+00> : vector<128x8xf32>
    %2 = tpu.matmul %1, %0, %cst {dimension_numbers = #tpu.dot_dimension_numbers<[1], [1], [0], [0], [0, 0, 1, 0], [], []>} : vector<128x16xf32>, vector<8x16xf32>, vector<128x8xf32> -> vector<128x8xf32>
    %c0_3 = arith.constant 0 : index
    %c0_4 = arith.constant 0 : index
    %3 = vector.load %arg3[%c0_3, %c0_4] : memref<128x1xf32, #tpu.memory_space<vmem>>, vector<128x1xf32>
    %4 = vector.broadcast %3 : vector<128x1xf32> to vector<128x8xf32>
    %5 = arith.addf %2, %4 : vector<128x8xf32>
    %cst_5 = arith.constant 0.000000e+00 : f32
    %6 = vector.broadcast %cst_5 : f32 to vector<128x8xf32>
    %7 = arith.maximumf %5, %6 : vector<128x8xf32>
    %c0_6 = arith.constant 0 : index
    %c0_7 = arith.constant 0 : index
    %8 = vector.load %arg4[%c0_6, %c0_7] : memref<64x128xf32, #tpu.memory_space<vmem>>, vector<64x128xf32>
    %cst_8 = arith.constant dense<0.000000e+00> : vector<64x8xf32>
    %9 = tpu.matmul %8, %7, %cst_8 {dimension_numbers = #tpu.dot_dimension_numbers<[1], [0], [0], [1], [0, 0, 1, 1], [], []>} : vector<64x128xf32>, vector<128x8xf32>, vector<64x8xf32> -> vector<64x8xf32>
    %c0_9 = arith.constant 0 : index
    %c0_10 = arith.constant 0 : index
    %10 = vector.load %arg5[%c0_9, %c0_10] : memref<64x1xf32, #tpu.memory_space<vmem>>, vector<64x1xf32>
    %11 = vector.broadcast %10 : vector<64x1xf32> to vector<64x8xf32>
    %12 = arith.addf %9, %11 : vector<64x8xf32>
    %cst_11 = arith.constant 0.000000e+00 : f32
    %13 = vector.broadcast %cst_11 : f32 to vector<64x8xf32>
    %14 = arith.maximumf %12, %13 : vector<64x8xf32>
    %c0_12 = arith.constant 0 : index
    %c0_13 = arith.constant 0 : index
    %15 = vector.load %arg6[%c0_12, %c0_13] : memref<8x64xf32, #tpu.memory_space<vmem>>, vector<8x64xf32>
    %cst_14 = arith.constant dense<0.000000e+00> : vector<8x8xf32>
    %16 = tpu.matmul %15, %14, %cst_14 {dimension_numbers = #tpu.dot_dimension_numbers<[1], [0], [0], [1], [0, 0, 1, 1], [], []>} : vector<8x64xf32>, vector<64x8xf32>, vector<8x8xf32> -> vector<8x8xf32>
    %c0_15 = arith.constant 0 : index
    %c0_16 = arith.constant 0 : index
    %17 = vector.load %arg7[%c0_15, %c0_16] : memref<8x1xf32, #tpu.memory_space<vmem>>, vector<8x1xf32>
    %18 = vector.broadcast %17 : vector<8x1xf32> to vector<8x8xf32>
    %19 = arith.addf %16, %18 : vector<8x8xf32>
    %c0_17 = arith.constant 0 : index
    %c0_18 = arith.constant 0 : index
    %20 = vector.load %arg8[%c0_17, %c0_18] : memref<8x8xf32, #tpu.memory_space<vmem>>, vector<8x8xf32>
    tpu.vector_store %arg8[%c0_17, %c0_18], %19 {strides = array<i32>} : memref<8x8xf32, #tpu.memory_space<vmem>>, vector<8x8xf32>,
    return
  }
  func.func @transform_0(%arg0: i32) -> (i32, i32) {
    %c0_i32 = arith.constant 0 : i32
    %c0_i32_0 = arith.constant 0 : i32
    return %arg0, %c0_i32 : i32, i32
  }
  func.func @transform_1(%arg0: i32) -> (i32, i32) {
    %c0_i32 = arith.constant 0 : i32
    %c0_i32_0 = arith.constant 0 : i32
    %c0_i32_1 = arith.constant 0 : i32
    return %c0_i32, %c0_i32_0 : i32, i32
  }
  func.func @transform_2(%arg0: i32) -> (i32, i32) {
    %c0_i32 = arith.constant 0 : i32
    %c0_i32_0 = arith.constant 0 : i32
    %c0_i32_1 = arith.constant 0 : i32
    return %c0_i32, %c0_i32_0 : i32, i32
  }
  func.func @transform_3(%arg0: i32) -> (i32, i32) {
    %c0_i32 = arith.constant 0 : i32
    %c0_i32_0 = arith.constant 0 : i32
    %c0_i32_1 = arith.constant 0 : i32
    return %c0_i32, %c0_i32_0 : i32, i32
  }
  func.func @transform_4(%arg0: i32) -> (i32, i32) {
    %c0_i32 = arith.constant 0 : i32
    %c0_i32_0 = arith.constant 0 : i32
    %c0_i32_1 = arith.constant 0 : i32
    return %c0_i32, %c0_i32_0 : i32, i32
  }
  func.func @transform_5(%arg0: i32) -> (i32, i32) {
    %c0_i32 = arith.constant 0 : i32
    %c0_i32_0 = arith.constant 0 : i32
    %c0_i32_1 = arith.constant 0 : i32
    return %c0_i32, %c0_i32_0 : i32, i32
  }
  func.func @transform_6(%arg0: i32) -> (i32, i32) {
    %c0_i32 = arith.constant 0 : i32
    %c0_i32_0 = arith.constant 0 : i32
    %c0_i32_1 = arith.constant 0 : i32
    return %c0_i32, %c0_i32_0 : i32, i32
  }
  func.func @transform_7(%arg0: i32) -> (i32, i32) {
    %c0_i32 = arith.constant 0 : i32
    %c0_i32_0 = arith.constant 0 : i32
    return %c0_i32, %arg0 : i32, i32
  }
}

</mosaic_0001>

<bundles_post_ra>
// kernel: tpu_custom_call.1
= control target key start
LH: loop header
LB: loop body
LE: loop exit
PB: predicated region body
PF: predicated region fallthrough
CT: control target
= control target key end

     0   :  { %vm140_vm0 = vcmask 130048   ;;  %v851_v3 = vmov 0   ;;  %s1079_s0 = inlined_call_operand.vmem [shape: f32[8,16], index: 0, kind: input, shape index: {}]   ;;  %s1080_s1 = inlined_call_operand.vmem [shape: f32[128,16], index: 1, kind: input, shape index: {}]   ;;  %s1081_s2 = inlined_call_operand.vmem [shape: f32[128,1], index: 2, kind: input, shape index: {}]   ;;  %s1082_s3 = inlined_call_operand.vmem [shape: f32[64,128], index: 3, kind: input, shape index: {}]   ;;  %s1083_s4 = inlined_call_operand.vmem [shape: f32[64,1], index: 4, kind: input, shape index: {}]   ;;  %s1084_s5 = inlined_call_operand.vmem [shape: f32[8,64], index: 5, kind: input, shape index: {}]   ;;  %s1085_s6 = inlined_call_operand.vmem [shape: f32[8,1], index: 6, kind: input, shape index: {}]   ;;  %s1086_s7 = inlined_call_operand.hbm [shape: f32[8,8], index: 7, kind: output, shape index: {}]  }
   0x1   :  { %v27_v0 = vld [vmem:[%s1079_s0] sm:$0xff]  ;;  %v29_v2 = vld [vmem:[%s1080_s1 + $0x8] sm:$0xff]  ;;  %825 = vset.pattern.permute.xlu0 %v851_v3  ;;  %v30_v4 = vld [vmem:[%s1080_s1 + $0x10] sm:$0xff]  ;;  %826 = vset.pattern.permute.xlu1 %v851_v3 }
   0x2   :  { %v28_v1 = vld [vmem:[%s1080_s1] sm:$0xff]  ;;  %687 = vmatprep.subr.msk.mxu0 %vm140_vm0, %v27_v0  ;;  %v31_v6 = vld [vmem:[%s1080_s1 + $0x18] sm:$0xff]  ;;  %v46_v7 = vld [vmem:[%s1081_s2 + $0x10] sm:$0xff] }
   0x3   :  { %689 = vmatprep.mubr.msk.f32.mxu0 %vm140_vm0, %v28_v1  ;;  %688 = vmatpush3.xpose.msk.msra.mxu0 %vm140_vm0, %v27_v0  ;;  %v44_v5 = vld [vmem:[%s1081_s2] sm:$0xff]  ;;  %v45_v9 = vld [vmem:[%s1081_s2 + $0x8] sm:$0xff]  ;;  %v47_v10 = vld [vmem:[%s1081_s2 + $0x18] sm:$0xff] }
   0x4   :  { %62 = vperm.xlu0 %825, %v44_v5   ;;  %v32_v8 = vld [vmem:[%s1080_s1 + $0x20] sm:$0xff]  ;;  %72 = vperm.xlu1 %826, %v46_v7   ;;  %v33_v11 = vld [vmem:[%s1080_s1 + $0x28] sm:$0xff]  ;;  %v34_v12 = vld [vmem:[%s1080_s1 + $0x30] sm:$0xff] }
   0x5   :  { %v48_v13 = vld [vmem:[%s1081_s2 + $0x20] sm:$0xff]  ;;  %v49_v14 = vld [vmem:[%s1081_s2 + $0x28] sm:$0xff]  ;;  %v35_v15 = vld [vmem:[%s1080_s1 + $0x38] sm:$0xff] }
   0x6   :  { %690 = vmatmul.mubr.msk.f32.vlgmr.msra.gmra.mrb[0].mxu0 %vm140_vm0, %v29_v2 }
   0x7   :  { %692 = vmatprep.mubr.msk.f32.mxu0 %vm140_vm0, %v30_v4 }
   0x8   :  { %67 = vperm.xlu0 %825, %v45_v9   ;;  %77 = vperm.xlu1 %826, %v47_v10  }
   0xa   :  { %693 = vmatmul.mubr.msk.f32.gmra.mrb[2].mxu0 %vm140_vm0, %v31_v6 }
   0xb   :  { %695 = vmatprep.mubr.msk.f32.mxu0 %vm140_vm0, %v32_v8 }
   0xc   :  { %82 = vperm.xlu0 %825, %v48_v13  }
   0xe   :  { %696 = vmatmul.mubr.msk.f32.gmra.mrb[4].mxu0 %vm140_vm0, %v33_v11 }
   0xf   :  { %698 = vmatprep.mubr.msk.f32.mxu0 %vm140_vm0, %v34_v12 }
  0x10   :  { %12 = vsyncpa [#allocation3], 0  ;;  %v36_v16 = vld [vmem:[%s1080_s1 + $0x40] sm:$0xff]  ;;  %v50_v17 = vld [vmem:[%s1081_s2 + $0x30] sm:$0xff]  ;;  %87 = vperm.xlu1 %826, %v49_v14   ;;  %vm853_vm1 = vmmov 0   ;;  %vm529_vm2 = vcmask 523264  }
  0x11   :  { %v51_v18 = vld [vmem:[%s1081_s2 + $0x38] sm:$0xff]  ;;  %v37_v19 = vld [vmem:[%s1080_s1 + $0x48] sm:$0xff]  ;;  %92 = vperm.xlu0 %825, %v50_v17   ;;  %v38_v20 = vld [vmem:[%s1080_s1 + $0x50] sm:$0xff]  ;;  %vm603_vm3 = vcmask 64512  }
  0x12   :  { %699 = vmatmul.mubr.msk.f32.gmra.mrb[6].mxu0 %vm140_vm0, %v35_v15  ;;  %v52_v21 = vld [vmem:[%s1081_s2 + $0x40] sm:$0xff]  ;;  %v53_v22 = vld [vmem:[%s1081_s2 + $0x48] sm:$0xff]  ;;  %v39_v23 = vld [vmem:[%s1080_s1 + $0x58] sm:$0xff] }
  0x13   :  { %701 = vmatprep.mubr.msk.f32.mxu0 %vm140_vm0, %v36_v16  ;;  %v40_v24 = vld [vmem:[%s1080_s1 + $0x60] sm:$0xff]  ;;  %v54_v25 = vld [vmem:[%s1081_s2 + $0x50] sm:$0xff]  ;;  %v55_v26 = vld [vmem:[%s1081_s2 + $0x58] sm:$0xff] }
  0x14   :  { %97 = vperm.xlu1 %826, %v51_v18   ;;  %v41_v27 = vld [vmem:[%s1080_s1 + $0x68] sm:$0xff]  ;;  %v42_v28 = vld [vmem:[%s1080_s1 + $0x70] sm:$0xff]  ;;  %v56_v29 = vld [vmem:[%s1081_s2 + $0x60] sm:$0xff] }
  0x15   :  { %102 = vperm.xlu0 %825, %v52_v21   ;;  %v57_v30 = vld [vmem:[%s1081_s2 + $0x68] sm:$0xff]  ;;  %v43_v31 = vld [vmem:[%s1080_s1 + $0x78] sm:$0xff]  ;;  %v58_v32 = vld [vmem:[%s1081_s2 + $0x70] sm:$0xff] }
  0x16   :  { %702 = vmatmul.mubr.msk.f32.gmra.mrb[8].mxu0 %vm140_vm0, %v37_v19  ;;  %v59_v33 = vld [vmem:[%s1081_s2 + $0x78] sm:$0xff]  ;;  %v361_v34 = vld [vmem:[%s1083_s4] sm:$0xff]  ;;  %v362_v35 = vld [vmem:[%s1083_s4 + $0x8] sm:$0xff]  ;;  %s855_s2 = smov [#allocation2]  }
  0x17   :  { %704 = vmatprep.mubr.msk.f32.mxu0 %vm140_vm0, %v38_v20  ;;  %v363_v36 = vld [vmem:[%s1083_s4 + $0x10] sm:$0xff]  ;;  %v364_v37 = vld [vmem:[%s1083_s4 + $0x18] sm:$0xff]  ;;  %v365_v38 = vld [vmem:[%s1083_s4 + $0x20] sm:$0xff]  ;;  %s611_s24 = sshll.u32 %s855_s2, 4  ;;  %s612_s24 = int_to_ptr.vmem [resolvable:$true] %s611_s24 }
  0x18   :  { %107 = vperm.xlu1 %826, %v53_v22   ;;  %v366_v39 = vld [vmem:[%s1083_s4 + $0x28] sm:$0xff]  ;;  %v367_v40 = vld [vmem:[%s1083_s4 + $0x30] sm:$0xff]  ;;  %v368_v41 = vld [vmem:[%s1083_s4 + $0x38] sm:$0xff]  ;;  %s827_s25 = scalar_lea.vmem %s612_s24, 128  ;;  %p832_p1 = scmp.lt.s32.totalorder %s612_s24, %s612_s24 }
  0x19   :  { %112 = vperm.xlu0 %825, %v54_v25   ;;  %v523_v42 = vld [vmem:[%s1085_s6] sm:$0xff]  ;;  %p828_p0 = scmp.ne.s32.totalorder %s612_s24, %s827_s25  ;;  %p833_p2 = scmp.lt.s32.totalorder %s827_s25, %s827_s25 }
  0x1a   :  { %705 = vmatmul.mubr.msk.f32.gmra.mrb[10].mxu0 %vm140_vm0, %v39_v23  ;;  %v353_v43 = vld [vmem:[%s1082_s3] sm:$0xff] }
  0x1b   :  { %707 = vmatprep.mubr.msk.f32.mxu0 %vm140_vm0, %v40_v24  ;;  %745 = vmatprep.mubr.f32.mxu1 %v353_v43  ;;  %p834_p3 = por %p833_p2, %p832_p1 }
  0x1c   :  { %117 = vperm.xlu1 %826, %v55_v26  }
  0x1d   :  { %122 = vperm.xlu0 %825, %v56_v29   ;;  %p835_p4 = pnand %p834_p3, %p828_p0 }
  0x1e   :  { %708 = vmatmul.mubr.msk.f32.gmra.mrb[12].mxu0 %vm140_vm0, %v41_v27 }
  0x1f   :  { %710 = vmatprep.mubr.msk.f32.mxu0 %vm140_vm0, %v42_v28 }
  0x20   :  { %127 = vperm.xlu1 %826, %v57_v30  }
  0x21   :  { %132 = vperm.xlu0 %825, %v58_v32  }
  0x22   :  { %711 = vmatmul.mubr.msk.f32.gmra.mrb[14].mxu0 %vm140_vm0, %v43_v31 }
  0x24   :  { %137 = vperm.xlu1 %826, %v59_v33  }
  0x25   :  { %371 = vperm.xlu0 %825, %v361_v34  }
  0x28   :  { %376 = vperm.xlu1 %826, %v362_v35  }
  0x29   :  { %381 = vperm.xlu0 %825, %v363_v36  }
  0x2c   :  { %386 = vperm.xlu1 %826, %v364_v37  }
  0x2d   :  { %391 = vperm.xlu0 %825, %v365_v38  }
  0x30   :  { %396 = vperm.xlu1 %826, %v366_v39  }
  0x31   :  { %401 = vperm.xlu0 %825, %v367_v40  }
  0x34   :  { %406 = vperm.xlu1 %826, %v368_v41  }
  0x35   :  { %526 = vperm.xlu0 %825, %v523_v42  }
  0x83   :  { %v73_v44 = vpop.permute.xlu1 %72  ;;  %v63_v45 = vpop.permute.xlu0 %62 }
  0x87   :  { %v78_v46 = vpop.permute.xlu1 %77  ;;  %v68_v47 = vpop.permute.xlu0 %67 }
  0x8b   :  { %v83_v49 = vpop.permute.xlu0 %82 }
  0x8f   :  { %v88_v48 = vpop.permute.xlu1 %87 }
  0x90   :  { %v93_v58 = vpop.permute.xlu0 %92 }
  0x93   :  { %v98_v55 = vpop.permute.xlu1 %97 }
  0x94   :  { %v103_v7 = vpop.permute.xlu0 %102 }
  0x97   :  { %v108_v4 = vpop.permute.xlu1 %107 }
  0x98   :  { %v113_v19 = vpop.permute.xlu0 %112 }
  0x9b   :  { %v118_v16 = vpop.permute.xlu1 %117 }
  0x9c   :  { %v123_v32 = vpop.permute.xlu0 %122 }
  0x9f   :  { %v128_v29 = vpop.permute.xlu1 %127 }
  0xa3   :  { %v138_v41 = vpop.permute.xlu1 %137 }
  0xd9   :  { %v691_v50 = vpop.f32.mrb[0].mxu0 }
  0xda   :  { %v264_v51 = vadd.f32 %v691_v50, %v68_v47  ;;  %v258_v52 = vpop.f32.mrb[1].mxu0 }
  0xdb   :  { %v259_v53 = vadd.f32 %v258_v52, %v63_v45  ;;  %v354_v52 = vld [vmem:[%s1082_s3 + $0x8] sm:$0xff] }
  0xdc   :  { %v338_v54 = vmax.f32 %v264_v51, 0.0 }
  0xdd   :  { %v337_v56 = vmax.f32 %v259_v53, 0.0  ;;  %v694_v57 = vpop.f32.mrb[2].mxu0  ;;  %v355_v53 = vld [vmem:[%s1082_s3 + $0x10] sm:$0xff] }
  0xde   :  { %v274_v59 = vadd.f32 %v694_v57, %v78_v46  ;;  %v268_v60 = vpop.f32.mrb[3].mxu0  ;;  %v359_v57 = vld [vmem:[%s1082_s3 + $0x30] sm:$0xff] }
  0xdf   :  { %v269_v61 = vadd.f32 %v268_v60, %v73_v44  ;;  %v776_v62 = vpack.c.bf16 %v338_v54, %v337_v56  ;;  %v133_v44 = vpop.permute.xlu0 %132  ;;  %v356_v54 = vld [vmem:[%s1082_s3 + $0x18] sm:$0xff]  ;;  %v358_v56 = vld [vmem:[%s1082_s3 + $0x28] sm:$0xff]  ;;  %v854_v60 = vmov 0.0  }
  0xe0   :  { %v340_v63 = vmax.f32 %v274_v59, 0.0  ;;  %v852_v59 = vmov 0.0|0.0   ;;  %773 = vmatprep.mubr.msk.f32.mxu0 %vm853_vm1, %v854_v60 }
  0xe1   :  { %v339_v0 = vmax.f32 %v269_v61, 0.0  ;;  %v697_v1 = vpop.f32.mrb[4].mxu0  ;;  %777 = vmatprep.subr.bf16.mxu1 %v776_v62  ;;  %808 = vmatprep.subr.bf16.mxu0 %v852_v59  ;;  %v377_v61 = vpop.permute.xlu1 %376 }
  0xe2   :  { %v284_v2 = vadd.f32 %v697_v1, %v88_v48  ;;  %v278_v3 = vpop.f32.mrb[5].mxu0  ;;  %779 = vmatpush3.bf16.msra.mxu1 %v776_v62 }
  0xe3   :  { %v780_v5 = vpack.c.bf16 %v340_v63, %v339_v0  ;;  %v279_v6 = vadd.f32 %v278_v3, %v83_v49  ;;  %v372_v62 = vpop.permute.xlu0 %371 }
  0xe4   :  { %v342_v8 = vmax.f32 %v284_v2, 0.0 }
  0xe5   :  { %v341_v9 = vmax.f32 %v279_v6, 0.0  ;;  %v700_v10 = vpop.f32.mrb[6].mxu0  ;;  %781 = vmatprep.subr.bf16.mxu1 %v780_v5  ;;  %v387_v63 = vpop.permute.xlu1 %386 }
  0xe6   :  { %v294_v11 = vadd.f32 %v700_v10, %v98_v55  ;;  %v288_v12 = vpop.f32.mrb[7].mxu0  ;;  %783 = vmatpush3.bf16.msra.mxu1 %v780_v5  ;;  %v357_v55 = vld [vmem:[%s1082_s3 + $0x20] sm:$0xff] }
  0xe7   :  { %v784_v13 = vpack.c.bf16 %v342_v8, %v341_v9  ;;  %v289_v14 = vadd.f32 %v288_v12, %v93_v58  ;;  %v360_v58 = vld [vmem:[%s1082_s3 + $0x38] sm:$0xff]  ;;  %v382_v1 = vpop.permute.xlu0 %381 }
  0xe8   :  { %v344_v15 = vmax.f32 %v294_v11, 0.0 }
  0xe9   :  { %v343_v17 = vmax.f32 %v289_v14, 0.0  ;;  %v703_v18 = vpop.f32.mrb[8].mxu0  ;;  %785 = vmatprep.subr.bf16.mxu1 %v784_v13  ;;  %v397_v10 = vpop.permute.xlu1 %396 }
  0xea   :  { %v304_v20 = vadd.f32 %v703_v18, %v108_v4  ;;  %v298_v21 = vpop.f32.mrb[9].mxu0  ;;  %787 = vmatpush3.bf16.msra.mxu1 %v784_v13 }
  0xeb   :  { %v788_v22 = vpack.c.bf16 %v344_v15, %v343_v17  ;;  %v299_v23 = vadd.f32 %v298_v21, %v103_v7  ;;  %v392_v13 = vpop.permute.xlu0 %391 }
  0xec   :  { %v346_v24 = vmax.f32 %v304_v20, 0.0 }
  0xed   :  { %v345_v25 = vmax.f32 %v299_v23, 0.0  ;;  %v706_v26 = vpop.f32.mrb[10].mxu0  ;;  %789 = vmatprep.subr.bf16.mxu1 %v788_v22 }
  0xee   :  { %v314_v27 = vadd.f32 %v706_v26, %v118_v16  ;;  %v308_v28 = vpop.f32.mrb[11].mxu0  ;;  %791 = vmatpush3.bf16.msra.mxu1 %v788_v22  ;;  %v407_v22 = vpop.permute.xlu1 %406 }
  0xef   :  { %v792_v30 = vpack.c.bf16 %v346_v24, %v345_v25  ;;  %v309_v31 = vadd.f32 %v308_v28, %v113_v19  ;;  %v402_v25 = vpop.permute.xlu0 %401 }
  0xf0   :  { %v348_v33 = vmax.f32 %v314_v27, 0.0 }
  0xf1   :  { %v347_v34 = vmax.f32 %v309_v31, 0.0  ;;  %v709_v35 = vpop.f32.mrb[12].mxu0  ;;  %793 = vmatprep.subr.bf16.mxu1 %v792_v30 }
  0xf2   :  { %v324_v36 = vadd.f32 %v709_v35, %v128_v29  ;;  %v318_v37 = vpop.f32.mrb[13].mxu0  ;;  %795 = vmatpush3.bf16.msra.mxu1 %v792_v30 }
  0xf3   :  { %v796_v38 = vpack.c.bf16 %v348_v33, %v347_v34  ;;  %v319_v39 = vadd.f32 %v318_v37, %v123_v32  ;;  %v522_v33 = vld [vmem:[%s1084_s5] sm:$0xff]  ;;  %v527_v34 = vpop.permute.xlu0 %526 }
  0xf4   :  { %v350_v40 = vmax.f32 %v324_v36, 0.0 }
  0xf5   :  { %v349_v42 = vmax.f32 %v319_v39, 0.0  ;;  %v712_v43 = vpop.f32.mrb[14].mxu0  ;;  %797 = vmatprep.subr.bf16.mxu1 %v796_v38 }
  0xf6   :  { %v334_v45 = vadd.f32 %v712_v43, %v138_v41  ;;  %v328_v46 = vpop.f32.mrb[15].mxu0  ;;  %799 = vmatpush3.bf16.msra.mxu1 %v796_v38 }
  0xf7   :  { %v800_v47 = vpack.c.bf16 %v350_v40, %v349_v42  ;;  %v329_v48 = vadd.f32 %v328_v46, %v133_v44 }
  0xf8   :  { %v352_v49 = vmax.f32 %v334_v45, 0.0 }
  0xf9   :  { %v351_v50 = vmax.f32 %v329_v48, 0.0  ;;  %801 = vmatprep.subr.bf16.mxu1 %v800_v47 }
  0xfa   :  { %803 = vmatpush3.bf16.msra.mxu1 %v800_v47 }
  0xfb   :  { %v804_v51 = vpack.c.bf16 %v352_v49, %v351_v50 }
  0xfd   :  { %805 = vmatprep.subr.bf16.mxu1 %v804_v51 }
  0xfe   :  { %807 = vmatpush3.bf16.msra.mxu1 %v804_v51 }
 0x101   :  { %746 = vmatmul.mubr.f32.vlgmr.msra.gmra.mrb[0].mxu1 %v354_v52 }
 0x102   :  { %748 = vmatprep.mubr.f32.mxu1 %v355_v53 }
 0x105   :  { %749 = vmatmul.mubr.f32.gmra.mrb[2].mxu1 %v356_v54 }
 0x106   :  { %751 = vmatprep.mubr.f32.mxu1 %v357_v55 }
 0x109   :  { %752 = vmatmul.mubr.f32.gmra.mrb[4].mxu1 %v358_v56 }
 0x10a   :  { %754 = vmatprep.mubr.f32.mxu1 %v359_v57 }
 0x10d   :  { %755 = vmatmul.mubr.f32.gmra.mrb[6].mxu1 %v360_v58 }
 0x1d4   :  { %v747_v0 = vpop.f32.mrb[0].mxu1 }
 0x1d5   :  { %v481_v2 = vadd.f32 %v747_v0, %v377_v61  ;;  %v475_v3 = vpop.f32.mrb[1].mxu1 }
 0x1d6   :  { %v476_v4 = vadd.f32 %v475_v3, %v372_v62 }
 0x1d7   :  { %v515_v5 = vmax.f32 %v481_v2, 0.0 }
 0x1d8   :  { %v514_v6 = vmax.f32 %v476_v4, 0.0  ;;  %v750_v7 = vpop.f32.mrb[2].mxu1 }
 0x1d9   :  { %v491_v8 = vadd.f32 %v750_v7, %v387_v63  ;;  %v485_v9 = vpop.f32.mrb[3].mxu1 }
 0x1da   :  { %v809_v11 = vpack.c.bf16 %v515_v5, %v514_v6  ;;  %v486_v12 = vadd.f32 %v485_v9, %v382_v1 }
 0x1db   :  { %v517_v14 = vmax.f32 %v491_v8, 0.0 }
 0x1dc   :  { %v516_v15 = vmax.f32 %v486_v12, 0.0  ;;  %v753_v16 = vpop.f32.mrb[4].mxu1  ;;  %810 = vmatpush3.bf16.msra.mxu0 %v809_v11 }
 0x1dd   :  { %v501_v17 = vadd.f32 %v753_v16, %v397_v10  ;;  %v495_v18 = vpop.f32.mrb[5].mxu1  ;;  %811 = vmatprep.subr.bf16.mxu0 %v852_v59 }
 0x1de   :  { %v812_v19 = vpack.c.bf16 %v517_v14, %v516_v15  ;;  %v496_v20 = vadd.f32 %v495_v18, %v392_v13 }
 0x1df   :  { %v519_v21 = vmax.f32 %v501_v17, 0.0 }
 0x1e0   :  { %v518_v23 = vmax.f32 %v496_v20, 0.0  ;;  %v756_v24 = vpop.f32.mrb[6].mxu1  ;;  %813 = vmatpush3.bf16.msra.mxu0 %v812_v19 }
 0x1e1   :  { %v511_v26 = vadd.f32 %v756_v24, %v407_v22  ;;  %v505_v27 = vpop.f32.mrb[7].mxu1  ;;  %814 = vmatprep.subr.bf16.mxu0 %v852_v59 }
 0x1e2   :  { %v815_v28 = vpack.c.bf16 %v519_v21, %v518_v23  ;;  %v506_v29 = vadd.f32 %v505_v27, %v402_v25 }
 0x1e3   :  { %v521_v30 = vmax.f32 %v511_v26, 0.0 }
 0x1e4   :  { %v520_v31 = vmax.f32 %v506_v29, 0.0  ;;  %816 = vmatpush3.bf16.msra.mxu0 %v815_v28 }
 0x1e5   :  { %817 = vmatprep.subr.bf16.mxu0 %v852_v59 }
 0x1e6   :  { %v818_v32 = vpack.c.bf16 %v521_v30, %v520_v31 }
 0x1e8   :  { %819 = vmatpush3.bf16.msra.mxu0 %v818_v32 }
 0x1eb   :  { %774 = vmatmul.mubr.msk.f32.vlgmr.msra.gmra.mrb[16].mxu0 %vm529_vm2, %v522_v33 }
 0x2be   :  { %v599_v35 = vpop.f32.mrb[16].mxu0 }
 0x2bf   :  { %v600_v36 = vadd.f32 %v599_v35, %v527_v34  ;;  %v775_v37 = vpop.f32.mrb[17].mxu0 }
 0x2c1   :  { %604 = vst.msk [vmem:[#allocation2] sm:$0xff] %vm603_vm3, %v600_v36 }
 0x2c2   :  { %838 = shalt.err (!%p835_p4)
}
 0x2c3   :  { %s839_s27 = scalar_lea.hbm %s1086_s7, 128 }
 0x2c4   :  { %p840_p5 = scmp.ne.s32.totalorder %s1086_s7, %s839_s27  ;;  %p843_p6 = scmp.lt.u32.totalorder %s839_s27, %s1086_s7 }
 0x2c6   :  { %p845_p7 = pnand %p843_p6, %p840_p5 }
 0x2c8   :  { %848 = shalt.err (!%p845_p7)
}
 0x2c9   :  { %614 = dma.vmem_to_hbm [thread:$0]  %s612_s24, 128, %s1086_s7, [#allocation3]  }
 0x2ca   :  { %849 = dma.done.wait [#allocation3], 128  }
 0x2cb   :  { %850 = vsyncadd [#allocation3], 4294967168 }
 0x2cc   :  { %618 = vsyncpa [#allocation3], 1 }

</bundles_post_ra>
